<compile_context>
chip_gen: v7x
topology: tpu7x:2x2x1
jax: 0.10.0
libtpu: 0.0.40
codegen_flags: <defaults>
</compile_context>

<pallas_src>
import jax
import jax.numpy as jnp
from jax import lax
from jax.experimental import pallas as pl
from jax.experimental.pallas import tpu as pltpu

GAMMA = 1.5
ALPHA = 0.25

LANES = 128          # lane width (last dim of every block)
MAX_BLOCK_R = 4096   # 4096*128*4B = 2 MiB per f32 input block; 2 inputs x 2
                     # pipeline buffers = 8 MiB -> fits every chip's scoped VMEM
NEG_PAD = -100.0     # exp(-100) underflows to 0 -> padded loss is exactly 0


def _row_align(dtype) -> int:
    # sub-32-bit dtypes pack multiple rows per sublane; align blocks to the
    # packed tile (8 rows f32, 16 bf16/f16, 32 int8/fp8) to avoid relayouts.
    return 8 * max(1, 4 // jnp.dtype(dtype).itemsize)


def _make_kernel(block_r, n_blocks, last_rows, gamma, alpha):
    need_row_mask = last_rows != block_r   # static: final block has overhang rows

    def kernel(pred_ref, true_ref, out_ref):
        i = pl.program_id(0)

        @pl.when(i == 0)
        def _init():
            out_ref[...] = jnp.zeros_like(out_ref)

        x = pred_ref[...].astype(jnp.float32)
        y = true_ref[...].astype(jnp.float32)

        # BCEWithLogits (stable): max(x,0) - x*y + log1p(exp(-|x|))
        e = jnp.exp(-jnp.abs(x))                       # EUP
        bce = jnp.maximum(x, 0.0) - x * y + jnp.log1p(e)

        # sigmoid(x) reusing e; approx reciprocal (EUP slot) + one Newton step
        a = 1.0 + e
        r0 = pl.reciprocal(a, approx=True)
        r = r0 * (2.0 - a * r0)
        p = jnp.where(x >= 0.0, r, e * r)

        # d = 1 - p_t = p + y*(1 - 2p);  alpha_factor = (1-alpha) + y*(2*alpha-1)
        d = jnp.maximum(p + y * (1.0 - 2.0 * p), 0.0)
        alpha_factor = (1.0 - alpha) + y * (2.0 * alpha - 1.0)
        if gamma == 1.5:
            modulating = d * jnp.sqrt(d)               # d**1.5 (sqrt on EUP)
        else:
            # guard pow at d==0 against exp(gamma*log(0)) producing NaN
            modulating = jnp.where(
                d > 0.0, jnp.power(jnp.maximum(d, 1e-38), gamma), 0.0)

        loss = bce * alpha_factor * modulating

        def accumulate(v):
            # minor dims (8,128) match the native f32 vreg tile -> pure VPU adds
            out_ref[...] += jnp.sum(v.reshape(block_r // 8, 8, LANES), axis=0)

        if need_row_mask:
            # Only the final block reads past the end of the array (garbage
            # rows); mask them there and nowhere else. Row index < block_r,
            # so no int32-overflow risk.
            @pl.when(i == n_blocks - 1)
            def _tail():
                row = lax.broadcasted_iota(jnp.int32, loss.shape, 0)
                accumulate(jnp.where(row < last_rows, loss, 0.0))

            @pl.when(i != n_blocks - 1)
            def _body():
                accumulate(loss)
        else:
            accumulate(loss)

    return kernel


def focal_loss(pred, true, reduction="mean", gamma=GAMMA, alpha=ALPHA):
    """Focal loss over BCE-with-logits. `pred`/`true` may have any (same) shape."""
    assert pred.shape == true.shape
    n_valid = pred.size

    flat_p = pred.reshape(-1)   # reshape of contiguous array: free
    flat_t = true.reshape(-1)

    rem = n_valid % LANES
    if rem:
        # Loss-neutral padding: pred=-100 makes exp/sigmoid underflow to 0 and
        # the padded loss is exactly 0, so the kernel needs no column mask.
        # This copies both inputs once and only triggers when the element count
        # is not already a multiple of 128.
        col_pad = LANES - rem
        flat_p = jnp.pad(flat_p, (0, col_pad), constant_values=NEG_PAD)
        flat_t = jnp.pad(flat_t, (0, col_pad), constant_values=0)

    rows = flat_p.size // LANES
    align = max(_row_align(pred.dtype), _row_align(true.dtype))
    block_r = min(MAX_BLOCK_R, pl.cdiv(rows, align) * align)
    n_blocks = pl.cdiv(rows, block_r)
    last_rows = rows - (n_blocks - 1) * block_r      # valid rows in final block

    p2 = flat_p.reshape(rows, LANES)   # free bitcast of contiguous flat array
    t2 = flat_t.reshape(rows, LANES)

    kernel = _make_kernel(block_r, n_blocks, last_rows, gamma, alpha)

    in_spec = pl.BlockSpec((block_r, LANES), lambda i: (i, 0))
    out_spec = pl.BlockSpec((8, LANES), lambda i: (0, 0))   # resident accumulator

    partials = pl.pallas_call(
        kernel,
        out_shape=jax.ShapeDtypeStruct((8, LANES), jnp.float32),
        grid_spec=pltpu.PrefetchScalarGridSpec(
            num_scalar_prefetch=0,
            grid=(n_blocks,),
            in_specs=[in_spec, in_spec],
            out_specs=out_spec,
        ),
        compiler_params=pltpu.CompilerParams(
            dimension_semantics=("arbitrary",),
            vmem_limit_bytes=32 * 1024 * 1024,
        ),
    )(p2, t2)

    # single cross-lane/sublane reduce, done once outside the kernel
    total = jnp.sum(partials)

    if reduction == "mean":
        return total / n_valid
    elif reduction == "sum":
        return total
    else:
        # TODO(synk): reduction='none' (full elementwise map output) is not
        # wired through this reduced-scalar wrapper.
        raise NotImplementedError("reduction='none' not supported")


def _focal_loss_ref(pred, true, gamma=GAMMA, alpha=ALPHA):
    x = pred.astype(jnp.float32)
    y = true.astype(jnp.float32)
    bce = jnp.maximum(x, 0.0) - x * y + jnp.log1p(jnp.exp(-jnp.abs(x)))
    p = jax.nn.sigmoid(x)
    p_t = y * p + (1.0 - y) * (1.0 - p)
    alpha_factor = y * alpha + (1.0 - y) * (1.0 - alpha)
    modulating = (1.0 - p_t) ** gamma
    return jnp.mean(bce * alpha_factor * modulating)


if __name__ == "__main__":
    key = jax.random.PRNGKey(0)
    k1, k2 = jax.random.split(key)
    # NCHW-shaped logits/targets, as the detector head would produce.
    pred = jax.random.normal(k1, (2, 4, 16, 16), dtype=jnp.float32) * 2.0
    true = jax.random.bernoulli(k2, p=0.3, shape=(2, 4, 16, 16)).astype(jnp.float32)

    out = focal_loss(pred, true, reduction="mean")
    out = jax.block_until_ready(out)

    ref = _focal_loss_ref(pred, true)
    assert jnp.allclose(out, ref, rtol=1e-4, atol=1e-6), (out, ref)
    print("KERNEL_OK")
</pallas_src>

<mosaic_0001>
module attributes {stable_mosaic.version = 11 : i64} {
  func.func @kernel(%arg0: i32, %arg1: memref<16x128xf32, #tpu.memory_space<vmem>>, %arg2: memref<16x128xf32, #tpu.memory_space<vmem>>, %arg3: memref<8x128xf32, #tpu.memory_space<vmem>>) attributes {dimension_semantics = [#tpu.dimension_semantics<arbitrary>], iteration_bounds = array<i64: 1>, scalar_prefetch = 0 : i64, scratch_operands = 0 : i64, tpu.core_type = #tpu.core_type<tc>, window_params = [{transform_indices = @transform_0, window_bounds = array<i64: 16, 128>}, {transform_indices = @transform_1, window_bounds = array<i64: 16, 128>}, {pipeline_mode = #tpu.pipeline_mode<synchronous>, transform_indices = @transform_2, window_bounds = array<i64: 8, 128>}]} {
    %c0_i32 = arith.constant 0 : i32
    %0 = arith.cmpi eq, %arg0, %c0_i32 : i32
    %1 = arith.extui %0 : i1 to i32
    %c0_i32_0 = arith.constant 0 : i32
    %2 = arith.cmpi ne, %1, %c0_i32_0 : i32
    scf.if %2 {
      %cst_18 = arith.constant 0.000000e+00 : f32
      %47 = vector.broadcast %cst_18 : f32 to vector<8x128xf32>
      %c0_19 = arith.constant 0 : index
      %c0_20 = arith.constant 0 : index
      %48 = vector.load %arg3[%c0_19, %c0_20] : memref<8x128xf32, #tpu.memory_space<vmem>>, vector<8x128xf32>
      tpu.vector_store %arg3[%c0_19, %c0_20], %47 {strides = array<i32>} : memref<8x128xf32, #tpu.memory_space<vmem>>, vector<8x128xf32>,
    } else {
    }
    %c0 = arith.constant 0 : index
    %c0_1 = arith.constant 0 : index
    %3 = vector.load %arg1[%c0, %c0_1] : memref<16x128xf32, #tpu.memory_space<vmem>>, vector<16x128xf32>
    %c0_2 = arith.constant 0 : index
    %c0_3 = arith.constant 0 : index
    %4 = vector.load %arg2[%c0_2, %c0_3] : memref<16x128xf32, #tpu.memory_space<vmem>>, vector<16x128xf32>
    %5 = math.absf %3 : vector<16x128xf32>
    %cst = arith.constant 0.000000e+00 : f32
    %6 = vector.broadcast %cst : f32 to vector<16x128xf32>
    %7 = arith.subf %6, %5 : vector<16x128xf32>
    %8 = math.exp %7 : vector<16x128xf32>
    %cst_4 = arith.constant 0.000000e+00 : f32
    %9 = vector.broadcast %cst_4 : f32 to vector<16x128xf32>
    %10 = arith.maximumf %3, %9 : vector<16x128xf32>
    %11 = arith.mulf %3, %4 : vector<16x128xf32>
    %12 = arith.subf %10, %11 : vector<16x128xf32>
    %13 = math.log1p %8 : vector<16x128xf32>
    %14 = arith.addf %12, %13 : vector<16x128xf32>
    %cst_5 = arith.constant 1.000000e+00 : f32
    %15 = vector.broadcast %cst_5 : f32 to vector<16x128xf32>
    %16 = arith.addf %15, %8 : vector<16x128xf32>
    %17 = tpu.reciprocal %16 {approx = true} : vector<16x128xf32> -> vector<16x128xf32>
    %18 = arith.mulf %16, %17 : vector<16x128xf32>
    %cst_6 = arith.constant 2.000000e+00 : f32
    %19 = vector.broadcast %cst_6 : f32 to vector<16x128xf32>
    %20 = arith.subf %19, %18 : vector<16x128xf32>
    %21 = arith.mulf %17, %20 : vector<16x128xf32>
    %cst_7 = arith.constant 0.000000e+00 : f32
    %22 = vector.broadcast %cst_7 : f32 to vector<16x128xf32>
    %23 = arith.cmpf oge, %3, %22 : vector<16x128xf32>
    %24 = arith.mulf %8, %21 : vector<16x128xf32>
    %25 = arith.select %23, %21, %24 : vector<16x128xi1>, vector<16x128xf32>
    %cst_8 = arith.constant 2.000000e+00 : f32
    %26 = vector.broadcast %cst_8 : f32 to vector<16x128xf32>
    %27 = arith.mulf %26, %25 : vector<16x128xf32>
    %cst_9 = arith.constant 1.000000e+00 : f32
    %28 = vector.broadcast %cst_9 : f32 to vector<16x128xf32>
    %29 = arith.subf %28, %27 : vector<16x128xf32>
    %30 = arith.mulf %4, %29 : vector<16x128xf32>
    %31 = arith.addf %25, %30 : vector<16x128xf32>
    %cst_10 = arith.constant 0.000000e+00 : f32
    %32 = vector.broadcast %cst_10 : f32 to vector<16x128xf32>
    %33 = arith.maximumf %31, %32 : vector<16x128xf32>
    %cst_11 = arith.constant -5.000000e-01 : f32
    %34 = vector.broadcast %cst_11 : f32 to vector<16x128xf32>
    %35 = arith.mulf %4, %34 : vector<16x128xf32>
    %cst_12 = arith.constant 7.500000e-01 : f32
    %36 = vector.broadcast %cst_12 : f32 to vector<16x128xf32>
    %37 = arith.addf %36, %35 : vector<16x128xf32>
    %38 = math.sqrt %33 : vector<16x128xf32>
    %39 = arith.mulf %33, %38 : vector<16x128xf32>
    %40 = arith.mulf %14, %37 : vector<16x128xf32>
    %41 = arith.mulf %40, %39 : vector<16x128xf32>
    %c0_13 = arith.constant 0 : index
    %c0_14 = arith.constant 0 : index
    %42 = vector.load %arg3[%c0_13, %c0_14] : memref<8x128xf32, #tpu.memory_space<vmem>>, vector<8x128xf32>
    %43 = vector.shape_cast %41 : vector<16x128xf32> to vector<2x8x128xf32>
    %cst_15 = arith.constant dense<0.000000e+00> : vector<8x128xf32>
    %44 = vector.multi_reduction <add>, %43, %cst_15 [0] : vector<2x8x128xf32> to vector<8x128xf32>
    %45 = arith.addf %42, %44 : vector<8x128xf32>
    %c0_16 = arith.constant 0 : index
    %c0_17 = arith.constant 0 : index
    %46 = vector.load %arg3[%c0_16, %c0_17] : memref<8x128xf32, #tpu.memory_space<vmem>>, vector<8x128xf32>
    tpu.vector_store %arg3[%c0_16, %c0_17], %45 {strides = array<i32>} : memref<8x128xf32, #tpu.memory_space<vmem>>, vector<8x128xf32>,
    return
  }
  func.func @transform_0(%arg0: i32) -> (i32, i32) {
    %c0_i32 = arith.constant 0 : i32
    %c0_i32_0 = arith.constant 0 : i32
    return %arg0, %c0_i32 : i32, i32
  }
  func.func @transform_1(%arg0: i32) -> (i32, i32) {
    %c0_i32 = arith.constant 0 : i32
    %c0_i32_0 = arith.constant 0 : i32
    return %arg0, %c0_i32 : i32, i32
  }
  func.func @transform_2(%arg0: i32) -> (i32, i32) {
    %c0_i32 = arith.constant 0 : i32
    %c0_i32_0 = arith.constant 0 : i32
    %c0_i32_1 = arith.constant 0 : i32
    return %c0_i32, %c0_i32_0 : i32, i32
  }
}

</mosaic_0001>

<bundles_post_ra>
// kernel: tpu_custom_call.1
= control target key start
LH: loop header
LB: loop body
LE: loop exit
PB: predicated region body
PF: predicated region fallthrough
CT: control target
= control target key end

     0   :  { %7 = vsyncpa [#allocation3], 0  ;;  %s315_s0 = inlined_call_operand.hbm [shape: f32[16,128], index: 0, kind: input, shape index: {}]   ;;  %s316_s1 = inlined_call_operand.hbm [shape: f32[16,128], index: 1, kind: input, shape index: {}]   ;;  %s317_s2 = inlined_call_operand.hbm [shape: f32[8,128], index: 2, kind: output, shape index: {}]  }
   0x1   :  { %8 = vsyncpa [#allocation6], 0 }
   0x2   :  { %9 = vsyncpa [#allocation4], 0  ;;  %s247_s9 = smov [#allocation2]   ;;  %s175_s13 = scalar_lea.hbm %s315_s0, 256 }
   0x3   :  { %s15_s10 = sshll.u32 %s247_s9, 4  ;;  %p176_p0 = scmp.ne.s32.totalorder %s315_s0, %s175_s13  ;;  %s16_s10 = int_to_ptr.vmem [resolvable:$true] %s15_s10 }
   0x4   :  { %p179_p1 = scmp.lt.u32.totalorder %s175_s13, %s315_s0 }
   0x6   :  { %p181_p2 = pnand %p179_p1, %p176_p0 }
   0x8   :  { %184 = shalt.err (!%p181_p2)
}
   0x9   :  { %s185_s18 = scalar_lea.vmem %s16_s10, 256  ;;  %p190_p4 = scmp.lt.s32.totalorder %s16_s10, %s16_s10 }
   0xa   :  { %p186_p3 = scmp.ne.s32.totalorder %s16_s10, %s185_s18  ;;  %p191_p5 = scmp.lt.s32.totalorder %s185_s18, %s185_s18 }
   0xc   :  { %p192_p6 = por %p191_p5, %p190_p4 }
   0xe   :  { %p193_p7 = pnand %p192_p6, %p186_p3 }
  0x10   :  { %196 = shalt.err (!%p193_p7)
}
  0x11   :  { %s248_s19 = smov 128   ;;  %s249_s20 = smov 8  }
  0x12   :  { %21 = dma.hbm_to_vmem [thread:$0]  %s315_s0, 256, %s16_s10, [#allocation3], %s248_s19, %s248_s19, %s249_s20  }
  0x13   :  { %s250_s23 = smov [#allocation5]   ;;  %s197_s27 = scalar_lea.hbm %s316_s1, 256 }
  0x14   :  { %s27_s24 = sshll.u32 %s250_s23, 4  ;;  %p198_p8 = scmp.ne.s32.totalorder %s316_s1, %s197_s27  ;;  %s28_s24 = int_to_ptr.vmem [resolvable:$true] %s27_s24 }
  0x15   :  { %p201_p9 = scmp.lt.u32.totalorder %s197_s27, %s316_s1 }
  0x17   :  { %p203_p10 = pnand %p201_p9, %p198_p8 }
  0x19   :  { %206 = shalt.err (!%p203_p10)
}
  0x1a   :  { %s207_s4 = scalar_lea.vmem %s28_s24, 256  ;;  %p212_p12 = scmp.lt.s32.totalorder %s28_s24, %s28_s24 }
  0x1b   :  { %p208_p11 = scmp.ne.s32.totalorder %s28_s24, %s207_s4  ;;  %p213_p13 = scmp.lt.s32.totalorder %s207_s4, %s207_s4 }
  0x1d   :  { %p214_p0 = por %p213_p13, %p212_p12 }
  0x1f   :  { %p215_p1 = pnand %p214_p0, %p208_p11 }
  0x21   :  { %218 = shalt.err (!%p215_p1)
}
  0x22   :  { %33 = dma.hbm_to_vmem [thread:$0]  %s316_s1, 256, %s28_s24, [#allocation6], %s248_s19, %s248_s19, %s249_s20  }
  0x23   :  { %241 = dma.done.wait [#allocation3], 256  }
  0x24   :  { %242 = vsyncadd [#allocation3], 4294967040 }
  0x25   :  { %243 = dma.done.wait [#allocation6], 256  }
  0x26   :  { %244 = vsyncadd [#allocation6], 4294967040  ;;  %v291_v0 = vld [vmem:[#allocation2] sm:$0xff]  ;;  %v293_v1 = vld [vmem:[#allocation2 + $0x8] sm:$0xff]  ;;  %s251_s1 = smov [#allocation7]  }
  0x27   :  { %v49_v2 = vand.u32 2147483647, %v291_v0  ;;  %v50_v3 = vand.u32 2147483647, %v293_v1  ;;  %vm93_vm0 = vcmp.ge.f32.partialorder %v291_v0, 0.0  ;;  %vm94_vm1 = vcmp.ge.f32.partialorder %v293_v1, 0.0 }
  0x28   :  { %v47_v25 = vld [vmem:[#allocation5] sm:$0xff]  ;;  %v48_v27 = vld [vmem:[#allocation5 + $0x8] sm:$0xff]  ;;  %v57_v44 = vmax.f32 %v291_v0, 0.0  ;;  %v58_v46 = vmax.f32 %v293_v1, 0.0  ;;  %s143_s6 = sshll.u32 %s251_s1, 4  ;;  %s144_s6 = int_to_ptr.vmem [resolvable:$true] %s143_s6 }
  0x29   :  { %v51_v4 = vsub.f32 0.0, %v49_v2  ;;  %v52_v5 = vsub.f32 0.0, %v50_v3  ;;  %v59_v45 = vmul.f32 %v47_v25, %v291_v0  ;;  %v60_v47 = vmul.f32 %v48_v27, %v293_v1  ;;  %s219_s7 = scalar_lea.vmem %s144_s6, 128  ;;  %p224_p3 = scmp.lt.s32.totalorder %s144_s6, %s144_s6 }
  0x2a   :  { %v109_v53 = vmul.f32 -0.5, %v47_v25  ;;  %v110_v56 = vmul.f32 -0.5, %v48_v27  ;;  %p220_p2 = scmp.ne.s32.totalorder %s144_s6, %s219_s7  ;;  %p225_p4 = scmp.lt.s32.totalorder %s219_s7, %s219_s7 }
  0x2b   :  { %v53_v6 = vmul.f32 1.442695, %v51_v4  ;;  %v55_v7 = vmul.f32 1.442695, %v52_v5  ;;  %v61_v52 = vsub.f32 %v57_v44, %v59_v45  ;;  %v62_v54 = vsub.f32 %v58_v46, %v60_v47 }
  0x2c   :  { %v111_v59 = vadd.f32 0.75, %v109_v53  ;;  %v112_v62 = vadd.f32 0.75, %v110_v56  ;;  %p226_p5 = por %p225_p4, %p224_p3 }
  0x2d   :  { %159 = vpow2.f32 %v53_v6 }
  0x2e   :  { %161 = vpow2.f32 %v55_v7  ;;  %p227_p6 = pnand %p226_p5, %p220_p2 }
  0x37   :  { %v160_v8 = vpop.eup %159 }
  0x38   :  { %v162_v9 = vpop.eup %161  ;;  %v63_v10 = vadd.f32 1.0, %v160_v8  ;;  %v66_v30 = vmul.f32 -0.5, %v160_v8  ;;  %v69_v39 = vand.u32 2147483647, %v160_v8 }
  0x39   :  { %v72_v11 = vadd.f32 1.0, %v162_v9  ;;  %v75_v32 = vmul.f32 -0.5, %v162_v9  ;;  %v78_v43 = vand.u32 2147483647, %v162_v9 }
  0x3a   :  { %163 = vrcp.f32 %v63_v10  ;;  %v67_v36 = vadd.f32 1.0, %v66_v30  ;;  %vm70_vm2 = vcmp.lt.f32.partialorder %v69_v39, 0.0004427343 }
  0x3b   :  { %165 = vrcp.f32 %v72_v11  ;;  %v76_v40 = vadd.f32 1.0, %v75_v32  ;;  %vm79_vm3 = vcmp.lt.f32.partialorder %v78_v43, 0.0004427343 }
  0x3c   :  { %167 = vlog2.f32 %v63_v10  ;;  %v68_v49 = vmul.f32 %v160_v8, %v67_v36 }
  0x3d   :  { %169 = vlog2.f32 %v72_v11  ;;  %v77_v51 = vmul.f32 %v162_v9, %v76_v40 }
  0x44   :  { %v164_v12 = vpop.eup %163 }
  0x45   :  { %v166_v13 = vpop.eup %165  ;;  %v87_v14 = vmul.f32 %v164_v12, %v63_v10 }
  0x46   :  { %v88_v15 = vmul.f32 %v166_v13, %v72_v11  ;;  %v168_v38 = vpop.eup %167 }
  0x47   :  { %v89_v16 = vsub.f32 2.0, %v87_v14  ;;  %v170_v42 = vpop.eup %169  ;;  %v65_v48 = vmul.f32 0.6931472, %v168_v38 }
  0x48   :  { %v90_v17 = vsub.f32 2.0, %v88_v15  ;;  %v74_v50 = vmul.f32 0.6931472, %v170_v42 }
  0x49   :  { %v91_v18 = vmul.f32 %v164_v12, %v89_v16  ;;  %v71_v55 = vsel %vm70_vm2, %v68_v49, %v65_v48 }
  0x4a   :  { %v92_v19 = vmul.f32 %v166_v13, %v90_v17  ;;  %v80_v57 = vsel %vm79_vm3, %v77_v51, %v74_v50  ;;  %v81_v58 = vadd.f32 %v71_v55, %v61_v52 }
  0x4b   :  { %v95_v20 = vmul.f32 %v160_v8, %v91_v18  ;;  %v82_v61 = vadd.f32 %v80_v57, %v62_v54 }
  0x4c   :  { %v96_v21 = vmul.f32 %v162_v9, %v92_v19  ;;  %v129_v5 = vmul.f32 %v111_v59, %v81_v58 }
  0x4d   :  { %v97_v22 = vsel %vm93_vm0, %v91_v18, %v95_v20  ;;  %v130_v8 = vmul.f32 %v112_v62, %v82_v61 }
  0x4e   :  { %v98_v23 = vsel %vm94_vm1, %v92_v19, %v96_v21  ;;  %v99_v24 = vmul.f32 2.0, %v97_v22 }
  0x4f   :  { %v100_v26 = vmul.f32 2.0, %v98_v23 }
  0x50   :  { %v101_v28 = vsub.f32 1.0, %v99_v24 }
  0x51   :  { %v102_v29 = vsub.f32 1.0, %v100_v26 }
  0x52   :  { %v103_v31 = vmul.f32 %v101_v28, %v47_v25 }
  0x53   :  { %v104_v33 = vmul.f32 %v102_v29, %v48_v27 }
  0x54   :  { %v105_v34 = vadd.f32 %v103_v31, %v97_v22 }
  0x55   :  { %v106_v35 = vadd.f32 %v104_v33, %v98_v23 }
  0x56   :  { %v107_v37 = vmax.f32 %v105_v34, 0.0 }
  0x57   :  { %v108_v41 = vmax.f32 %v106_v35, 0.0 }
  0x58   :  { %171 = vrsqrt.f32 %v107_v37  ;;  %vm115_vm4 = vcmp.eq.f32.partialorder %v107_v37, inf  ;;  %v118_v63 = vand.u32 2147483648, %v107_v37  ;;  %vm117_vm5 = vcmp.eq.f32.partialorder %v107_v37, 0.0 }
  0x59   :  { %173 = vrsqrt.f32 %v108_v41  ;;  %vm122_vm6 = vcmp.eq.f32.partialorder %v108_v41, inf  ;;  %v125_v2 = vand.u32 2147483648, %v108_v41  ;;  %vm124_vm7 = vcmp.eq.f32.partialorder %v108_v41, 0.0 }
  0x62   :  { %v172_v60 = vpop.eup %171 }
  0x63   :  { %v174_v0 = vpop.eup %173  ;;  %v114_v1 = vmul.f32 %v172_v60, %v107_v37 }
  0x64   :  { %v121_v3 = vmul.f32 %v174_v0, %v108_v41 }
  0x65   :  { %v116_v4 = vsel %vm115_vm4, %v107_v37, %v114_v1 }
  0x66   :  { %v119_v6 = vsel %vm117_vm5, %v118_v63, %v116_v4  ;;  %v123_v7 = vsel %vm122_vm6, %v108_v41, %v121_v3 }
  0x67   :  { %v126_v9 = vsel %vm124_vm7, %v125_v2, %v123_v7  ;;  %v127_v10 = vmul.f32 %v119_v6, %v107_v37 }
  0x68   :  { %v128_v11 = vmul.f32 %v126_v9, %v108_v41 }
  0x69   :  { %v131_v12 = vmul.f32 %v129_v5, %v127_v10 }
  0x6a   :  { %v132_v13 = vmul.f32 %v130_v8, %v128_v11 }
  0x6c   :  { %v134_v14 = vadd.f32 %v132_v13, %v131_v12 }
  0x6e   :  { %136 = vst [vmem:[#allocation7] sm:$0xff] %v134_v14 }
  0x6f   :  { %230 = shalt.err (!%p227_p6)
}
  0x70   :  { %s231_s10 = scalar_lea.hbm %s317_s2, 128 }
  0x71   :  { %p232_p7 = scmp.ne.s32.totalorder %s317_s2, %s231_s10  ;;  %p235_p8 = scmp.lt.u32.totalorder %s231_s10, %s317_s2 }
  0x73   :  { %p237_p9 = pnand %p235_p8, %p232_p7 }
  0x75   :  { %240 = shalt.err (!%p237_p9)
}
  0x76   :  { %146 = dma.vmem_to_hbm [thread:$0]  %s144_s6, 128, %s317_s2, [#allocation4]  }
  0x77   :  { %245 = dma.done.wait [#allocation4], 128  }
  0x78   :  { %246 = vsyncadd [#allocation4], 4294967168 }
  0x79   :  { %150 = vsyncpa [#allocation3], 1 }
  0x7a   :  { %151 = vsyncpa [#allocation6], 1 }
  0x7b   :  { %152 = vsyncpa [#allocation4], 1 }

</bundles_post_ra>
